<compile_context>
chip_gen: v7x
topology: tpu7x:2x2x1
jax: 0.10.0
libtpu: 0.0.40
codegen_flags: <defaults>
</compile_context>

<pallas_src>
import math
from functools import partial

import jax
import jax.numpy as jnp
from jax import lax
from jax.experimental import pallas as pl
from jax.experimental.pallas import tpu as pltpu


def _layernorm(x, g, b, eps=1e-5):
    mu = jnp.mean(x, axis=-1, keepdims=True)
    var = jnp.mean((x - mu) ** 2, axis=-1, keepdims=True)
    return (x - mu) * lax.rsqrt(var + eps) * g + b


# --------------------- 1x1 conv (pointwise linear) kernel ---------------------
def _conv1x1_kernel(x_ref, w_ref, b_ref, o_ref):
    # x: (tile_t, Cin) f32, w: (Cin, D) bf16, b: (1, D) f32 -> o: (tile_t, D)
    o_ref[...] = (
        jnp.dot(x_ref[...].astype(jnp.bfloat16), w_ref[...],
                preferred_element_type=jnp.float32)
        + b_ref[...]
    )


def _row_tile(T, target=512):
    if T <= target:
        return T
    for t in range(target, 7, -1):
        if T % t == 0 and t % 8 == 0:
            return t
    return T


def conv1x1(tokens, w_t, b):
    T, Cin = tokens.shape
    D = w_t.shape[1]
    tile_t = _row_tile(T)
    return pl.pallas_call(
        _conv1x1_kernel,
        out_shape=jax.ShapeDtypeStruct((T, D), jnp.float32),
        grid=(T // tile_t,),
        in_specs=[
            pl.BlockSpec((tile_t, Cin), lambda i: (i, 0)),
            pl.BlockSpec((Cin, D), lambda i: (0, 0)),
            pl.BlockSpec((1, D), lambda i: (0, 0)),
        ],
        out_specs=pl.BlockSpec((tile_t, D), lambda i: (i, 0)),
        compiler_params=pltpu.CompilerParams(dimension_semantics=("parallel",)),
    )(tokens, w_t, b)


# ---------------- fused post-norm TransformerEncoder stack kernel -------------
def _encoder_stack_kernel(nhead, nlayers,
                          x_ref,
                          wq_ref, bq_ref, wk_ref, bk_ref, wv_ref, bv_ref,
                          wo_ref, bo_ref, w1_ref, b1_ref, w2_ref, b2_ref,
                          g1_ref, be1_ref, g2_ref, be2_ref,
                          o_ref, x_sc):
    layer = pl.program_id(1)

    @pl.when(layer == 0)
    def _():
        x_sc[...] = x_ref[0]                                   # (L, D) f32

    x = x_sc[...]
    L, D = x.shape
    xb = x.astype(jnp.bfloat16)

    # -- multi-head self attention: per-head weight slabs (leading-dim indexed),
    #    per-head output accumulated through the out projection (no concat).
    def head_body(h, acc):
        qh = jnp.dot(xb, wq_ref[h], preferred_element_type=jnp.float32) + bq_ref[h]
        kh = jnp.dot(xb, wk_ref[h], preferred_element_type=jnp.float32) + bk_ref[h]
        vh = jnp.dot(xb, wv_ref[h], preferred_element_type=jnp.float32) + bv_ref[h]
        s = lax.dot_general(                                   # (L, L) scores
            qh.astype(jnp.bfloat16), kh.astype(jnp.bfloat16),
            (((1,), (1,)), ((), ())),
            preferred_element_type=jnp.float32)
        s = s - jnp.max(s, axis=-1, keepdims=True)
        p = jnp.exp(s)
        p = p * pl.reciprocal(jnp.sum(p, axis=-1, keepdims=True), approx=True)
        oh = jnp.dot(p.astype(jnp.bfloat16), vh.astype(jnp.bfloat16),
                     preferred_element_type=jnp.float32)       # (L, dh)
        return acc + jnp.dot(oh.astype(jnp.bfloat16), wo_ref[h],
                             preferred_element_type=jnp.float32)

    attn = lax.fori_loop(0, nhead, head_body,
                         jnp.zeros((L, D), jnp.float32), unroll=True)
    attn = attn + bo_ref[0]

    # dropout is identity at inference time
    x = _layernorm(x + attn, g1_ref[0], be1_ref[0])
    h1 = jnp.maximum(
        jnp.dot(x.astype(jnp.bfloat16), w1_ref[0],
                preferred_element_type=jnp.float32) + b1_ref[0], 0.0)
    h2 = jnp.dot(h1.astype(jnp.bfloat16), w2_ref[0],
                 preferred_element_type=jnp.float32) + b2_ref[0]
    x = _layernorm(x + h2, g2_ref[0], be2_ref[0])

    x_sc[...] = x

    @pl.when(layer == nlayers - 1)
    def _():
        o_ref[0] = x


def encoder_stack(x, sp, nhead):
    N, L, D = x.shape
    nlayers = sp["w1"].shape[0]
    F = sp["w1"].shape[2]
    dh = D // nhead
    kernel = partial(_encoder_stack_kernel, nhead, nlayers)

    def per_layer(shape):
        return pl.BlockSpec(shape, lambda n, l: (l,) + (0,) * (len(shape) - 1))

    return pl.pallas_call(
        kernel,
        out_shape=jax.ShapeDtypeStruct((N, L, D), jnp.float32),
        grid=(N, nlayers),
        in_specs=[
            pl.BlockSpec((1, L, D), lambda n, l: (n, 0, 0)),       # activations
            per_layer((nhead, D, dh)), per_layer((nhead, 1, dh)),  # wq, bq
            per_layer((nhead, D, dh)), per_layer((nhead, 1, dh)),  # wk, bk
            per_layer((nhead, D, dh)), per_layer((nhead, 1, dh)),  # wv, bv
            per_layer((nhead, dh, D)), per_layer((1, 1, D)),       # wo, bo
            per_layer((1, D, F)), per_layer((1, 1, F)),            # linear1
            per_layer((1, F, D)), per_layer((1, 1, D)),            # linear2
            per_layer((1, 1, D)), per_layer((1, 1, D)),            # norm1
            per_layer((1, 1, D)), per_layer((1, 1, D)),            # norm2
        ],
        out_specs=pl.BlockSpec((1, L, D), lambda n, l: (n, 0, 0)),
        scratch_shapes=[pltpu.VMEM((L, D), jnp.float32)],
        compiler_params=pltpu.CompilerParams(
            dimension_semantics=("parallel", "arbitrary"),
            vmem_limit_bytes=64 * 1024 * 1024),
    )(x,
      sp["wq"], sp["bq"], sp["wk"], sp["bk"], sp["wv"], sp["bv"],
      sp["wo"], sp["bo"], sp["w1"], sp["b1"], sp["w2"], sp["b2"],
      sp["g1"], sp["be1"], sp["g2"], sp["be2"])


# ----------------- one-time weight re-layout for the fused kernel -------------
def _stack_layer_params(layers, nhead, D):
    """Pre-transpose / pre-split torch-layout params.

    Per-(layer, head) projection weights are stacked on a single leading axis
    of size nlayers*nhead (heads indexed on a leading, non-lane dim inside the
    kernel); matmul weights are stored pre-transposed in bf16; the 1/sqrt(dh)
    attention scale is folded into the q projection.
    """
    dh = D // nhead
    scale = 1.0 / math.sqrt(dh)

    def head_w(w2d, s=1.0):            # (D, D) rows=out -> (nhead, D, dh)
        return (jnp.transpose(w2d.reshape(nhead, dh, D), (0, 2, 1)) * s
                ).astype(jnp.bfloat16)

    def head_b(b1d, s=1.0):            # (D,) -> (nhead, 1, dh)
        return (b1d.reshape(nhead, 1, dh) * s).astype(jnp.float32)

    keys = ("wq", "bq", "wk", "bk", "wv", "bv", "wo", "bo",
            "w1", "b1", "w2", "b2", "g1", "be1", "g2", "be2")
    acc = {k: [] for k in keys}
    for lp in layers:
        wqkv, bqkv = lp["wqkv"], lp["bqkv"][0]
        acc["wq"].append(head_w(wqkv[:D], scale))
        acc["bq"].append(head_b(bqkv[:D], scale))
        acc["wk"].append(head_w(wqkv[D:2 * D]))
        acc["bk"].append(head_b(bqkv[D:2 * D]))
        acc["wv"].append(head_w(wqkv[2 * D:]))
        acc["bv"].append(head_b(bqkv[2 * D:]))
        acc["wo"].append(lp["wo"].T.reshape(nhead, dh, D).astype(jnp.bfloat16))
        acc["bo"].append(lp["bo"][None])                          # (1, 1, D)
        acc["w1"].append(lp["w1"].T.astype(jnp.bfloat16)[None])   # (1, D, F)
        acc["b1"].append(lp["b1"][None])
        acc["w2"].append(lp["w2"].T.astype(jnp.bfloat16)[None])   # (1, F, D)
        acc["b2"].append(lp["b2"][None])
        acc["g1"].append(lp["g1"][None]);  acc["be1"].append(lp["be1"][None])
        acc["g2"].append(lp["g2"][None]);  acc["be2"].append(lp["be2"][None])
    return {k: jnp.concatenate(v, axis=0) for k, v in acc.items()}


# --------------------------- parameters & forward -----------------------------
def init_params(key, feature_dim, encoder_dim, image_size, nhead, nlayers):
    D = encoder_dim
    F = 4 * D
    keys = jax.random.split(key, 3 + nlayers)
    params = {
        "conv_w": 0.05 * jax.random.normal(keys[0], (D, feature_dim), jnp.float32),
        "conv_b": 0.05 * jax.random.normal(keys[1], (1, D), jnp.float32),
        "pe": 0.05 * jax.random.normal(keys[2], (2 * image_size ** 2, 1, D),
                                       jnp.float32),
        "layers": [],
    }
    for i in range(nlayers):
        lk = jax.random.split(keys[3 + i], 8)
        params["layers"].append({
            "wqkv": 0.05 * jax.random.normal(lk[0], (3 * D, D), jnp.float32),
            "bqkv": 0.05 * jax.random.normal(lk[1], (1, 3 * D), jnp.float32),
            "wo":   0.05 * jax.random.normal(lk[2], (D, D), jnp.float32),
            "bo":   0.05 * jax.random.normal(lk[3], (1, D), jnp.float32),
            "w1":   0.05 * jax.random.normal(lk[4], (F, D), jnp.float32),
            "b1":   0.05 * jax.random.normal(lk[5], (1, F), jnp.float32),
            "w2":   0.05 * jax.random.normal(lk[6], (D, F), jnp.float32),
            "b2":   0.05 * jax.random.normal(lk[7], (1, D), jnp.float32),
            "g1": jnp.ones((1, D), jnp.float32),
            "be1": jnp.zeros((1, D), jnp.float32),
            "g2": jnp.ones((1, D), jnp.float32),
            "be2": jnp.zeros((1, D), jnp.float32),
        })
    return params


def mccformer_encoder_s(x1, x2, params, *, image_size, nhead):
    # x1, x2: [N, Cf, H, W]   (feature_extractor=None)
    N, Cf, H, W = x1.shape
    D = params["conv_w"].shape[0]
    feats = jnp.concatenate([x1, x2], axis=0)                   # [2N, Cf, H, W]
    tokens = feats.transpose(0, 2, 3, 1).reshape(2 * N * H * W, Cf)
    proj = conv1x1(tokens, params["conv_w"].T.astype(jnp.bfloat16),
                   params["conv_b"])                            # [2N*H*W, D]
    proj = proj.reshape(2 * N, H * W, D)
    # torch: [HW,2N,D] -> cat([f[:, :N], f[:, N:]], 0)  ==  per-batch concat of
    # the two timesteps along the sequence axis -> [N, L=2HW, D]
    x = jnp.concatenate([proj[:N], proj[N:]], axis=1)
    L = 2 * H * W
    x = x + params["pe"][:L, 0, :][None]                        # PE added once
    stacked = _stack_layer_params(params["layers"], nhead, D)
    x = encoder_stack(x, stacked, nhead)                        # [N, L, D]
    seq = x.transpose(1, 0, 2)                                  # [L, N, D]
    S = image_size ** 2
    return jnp.concatenate([seq[:S], seq[S:]], axis=2)          # [S, N, 2D]


# --------------------------- pure-JAX reference --------------------------------
def ref_forward(x1, x2, params, *, image_size, nhead):
    N, Cf, H, W = x1.shape
    D = params["conv_w"].shape[0]
    feats = jnp.concatenate([x1, x2], axis=0)
    y = (jnp.einsum("nchw,dc->ndhw", feats, params["conv_w"])
         + params["conv_b"][0][None, :, None, None])
    y = y.reshape(2 * N, D, H * W).transpose(2, 0, 1)           # [HW, 2N, D]
    seq = jnp.concatenate([y[:, :N], y[:, N:]], axis=0)         # [L, N, D]
    L = 2 * H * W
    seq = seq + params["pe"][:L]
    dh = D // nhead
    for lp in params["layers"]:
        x = seq
        qkv = jnp.einsum("lnd,ed->lne", x, lp["wqkv"]) + lp["bqkv"][0]
        q, k, v = qkv[..., :D], qkv[..., D:2 * D], qkv[..., 2 * D:]
        q = q.reshape(L, N, nhead, dh) / math.sqrt(dh)
        k = k.reshape(L, N, nhead, dh)
        v = v.reshape(L, N, nhead, dh)
        s = jnp.einsum("qnhd,knhd->nhqk", q, k)
        p = jax.nn.softmax(s, axis=-1)
        o = jnp.einsum("nhqk,knhd->qnhd", p, v).reshape(L, N, D)
        o = jnp.einsum("lnd,ed->lne", o, lp["wo"]) + lp["bo"][0]
        x = _layernorm(x + o, lp["g1"][0], lp["be1"][0])
        h1 = jax.nn.relu(jnp.einsum("lnd,fd->lnf", x, lp["w1"]) + lp["b1"][0])
        h2 = jnp.einsum("lnf,df->lnd", h1, lp["w2"]) + lp["b2"][0]
        seq = _layernorm(x + h2, lp["g2"][0], lp["be2"][0])
    S = image_size ** 2
    return jnp.concatenate([seq[:S], seq[S:]], axis=2)


if __name__ == "__main__":
    N, feature_dim, encoder_dim, image_size, nhead, nlayers = 2, 4, 32, 4, 4, 2
    key = jax.random.PRNGKey(0)
    k1, k2, kp = jax.random.split(key, 3)
    x1 = jax.random.normal(k1, (N, feature_dim, image_size, image_size), jnp.float32)
    x2 = jax.random.normal(k2, (N, feature_dim, image_size, image_size), jnp.float32)
    params = init_params(kp, feature_dim, encoder_dim, image_size, nhead, nlayers)

    out = jax.block_until_ready(
        mccformer_encoder_s(x1, x2, params, image_size=image_size, nhead=nhead))

    ref = ref_forward(x1, x2, params, image_size=image_size, nhead=nhead)
    assert out.shape == (image_size ** 2, N, 2 * encoder_dim), out.shape
    max_err = float(jnp.max(jnp.abs(out - ref)))
    # bf16 MXU operands + approx reciprocal -> relaxed tolerance vs f32 reference.
    assert jnp.allclose(out, ref, atol=5e-2, rtol=5e-2), max_err
    print("KERNEL_OK")
</pallas_src>

<mosaic_0001>
module attributes {stable_mosaic.version = 11 : i64} {
  func.func @_conv1x1_kernel(%arg0: i32, %arg1: memref<64x4xf32, #tpu.memory_space<vmem>>, %arg2: memref<4x32xbf16, #tpu.memory_space<vmem>>, %arg3: memref<1x32xf32, #tpu.memory_space<vmem>>, %arg4: memref<64x32xf32, #tpu.memory_space<vmem>>) attributes {dimension_semantics = [#tpu.dimension_semantics<parallel>], iteration_bounds = array<i64: 1>, scalar_prefetch = 0 : i64, scratch_operands = 0 : i64, tpu.core_type = #tpu.core_type<tc>, window_params = [{transform_indices = @transform_0, window_bounds = array<i64: 64, 4>}, {pipeline_mode = #tpu.pipeline_mode<synchronous>, transform_indices = @transform_1, window_bounds = array<i64: 4, 32>}, {pipeline_mode = #tpu.pipeline_mode<synchronous>, transform_indices = @transform_2, window_bounds = array<i64: 1, 32>}, {transform_indices = @transform_3, window_bounds = array<i64: 64, 32>}]} {
    %c0 = arith.constant 0 : index
    %c0_0 = arith.constant 0 : index
    %0 = vector.load %arg1[%c0, %c0_0] : memref<64x4xf32, #tpu.memory_space<vmem>>, vector<64x4xf32>
    %1 = arith.truncf %0 : vector<64x4xf32> to vector<64x4xbf16>
    %c0_1 = arith.constant 0 : index
    %c0_2 = arith.constant 0 : index
    %2 = vector.load %arg2[%c0_1, %c0_2] : memref<4x32xbf16, #tpu.memory_space<vmem>>, vector<4x32xbf16>
    %cst = arith.constant dense<0.000000e+00> : vector<64x32xf32>
    %3 = tpu.matmul %1, %2, %cst {dimension_numbers = #tpu.dot_dimension_numbers<[1], [0], [0], [1], [0, 0, 1, 1], [], []>} : vector<64x4xbf16>, vector<4x32xbf16>, vector<64x32xf32> -> vector<64x32xf32>
    %c0_3 = arith.constant 0 : index
    %c0_4 = arith.constant 0 : index
    %4 = vector.load %arg3[%c0_3, %c0_4] : memref<1x32xf32, #tpu.memory_space<vmem>>, vector<1x32xf32>
    %5 = vector.broadcast %4 : vector<1x32xf32> to vector<64x32xf32>
    %6 = arith.addf %3, %5 : vector<64x32xf32>
    %c0_5 = arith.constant 0 : index
    %c0_6 = arith.constant 0 : index
    %7 = vector.load %arg4[%c0_5, %c0_6] : memref<64x32xf32, #tpu.memory_space<vmem>>, vector<64x32xf32>
    tpu.vector_store %arg4[%c0_5, %c0_6], %6 {strides = array<i32>} : memref<64x32xf32, #tpu.memory_space<vmem>>, vector<64x32xf32>,
    return
  }
  func.func @transform_0(%arg0: i32) -> (i32, i32) {
    %c0_i32 = arith.constant 0 : i32
    %c0_i32_0 = arith.constant 0 : i32
    return %arg0, %c0_i32 : i32, i32
  }
  func.func @transform_1(%arg0: i32) -> (i32, i32) {
    %c0_i32 = arith.constant 0 : i32
    %c0_i32_0 = arith.constant 0 : i32
    %c0_i32_1 = arith.constant 0 : i32
    return %c0_i32, %c0_i32_0 : i32, i32
  }
  func.func @transform_2(%arg0: i32) -> (i32, i32) {
    %c0_i32 = arith.constant 0 : i32
    %c0_i32_0 = arith.constant 0 : i32
    %c0_i32_1 = arith.constant 0 : i32
    return %c0_i32, %c0_i32_0 : i32, i32
  }
  func.func @transform_3(%arg0: i32) -> (i32, i32) {
    %c0_i32 = arith.constant 0 : i32
    %c0_i32_0 = arith.constant 0 : i32
    return %arg0, %c0_i32 : i32, i32
  }
}

</mosaic_0001>

<bundles_post_ra>
// kernel: tpu_custom_call.1
= control target key start
LH: loop header
LB: loop body
LE: loop exit
PB: predicated region body
PF: predicated region fallthrough
CT: control target
= control target key end

     0   :  { %vm48_vm0 = vcmask 1041408   ;;  %vm35_vm1 = vcmask 31744   ;;  %vm117_vm2 = vcmask 261120   ;;  %s240_s1 = inlined_call_operand.vmem [shape: bf16[4,32], index: 1, kind: input, shape index: {}]   ;;  %s241_s0 = inlined_call_operand.vmem [shape: f32[64,4], index: 0, kind: input, shape index: {}]   ;;  %s242_s2 = inlined_call_operand.vmem [shape: f32[1,32], index: 2, kind: input, shape index: {}]   ;;  %s243_s3 = inlined_call_operand.vmem [shape: f32[64,32], index: 3, kind: output, shape index: {}]  }
   0x1   :  { %v27_v0 = vld [vmem:[%s240_s1] sm:$0x3]  ;;  %v16_v2 = vld [vmem:[%s241_s0 + $0x8] sm:$0xff]  ;;  %v17_v7 = vld [vmem:[%s241_s0 + $0x10] sm:$0xff] }
   0x2   :  { %v15_v1 = vld [vmem:[%s241_s0] sm:$0xff]  ;;  %152 = vmatprep.subr.msk.bf16.mxu0 %vm48_vm0, %v27_v0  ;;  %153 = vmatprep.subr.msk.bf16.mxu1 %vm48_vm0, %v27_v0  ;;  %v50_v3 = vsel %vm48_vm0, %v27_v0, 0  ;;  %v20_v6 = vld [vmem:[%s241_s0 + $0x28] sm:$0xff]  ;;  %v18_v9 = vld [vmem:[%s241_s0 + $0x18] sm:$0xff] }
   0x3   :  { %v23_v4 = vpack.c.bf16 %v16_v2, %v15_v1  ;;  %v19_v5 = vld [vmem:[%s241_s0 + $0x20] sm:$0xff]  ;;  %141 = vmatpush3.bf16.msra.mxu0 %v50_v3  ;;  %151 = vmatpush3.bf16.msra.mxu1 %v50_v3  ;;  %v21_v10 = vld [vmem:[%s241_s0 + $0x30] sm:$0xff]  ;;  %v22_v11 = vld [vmem:[%s241_s0 + $0x38] sm:$0xff]  ;;  %v24_v12 = vpack.c.bf16 %v18_v9, %v17_v7 }
   0x4   :  { %v25_v8 = vpack.c.bf16 %v20_v6, %v19_v5  ;;  %v26_v13 = vpack.c.bf16 %v22_v11, %v21_v10  ;;  %v130_v14 = vld [vmem:[%s242_s2] ss:$0 sm:$0xff] }
   0x5   :  { %142 = vmatprep.mubr.msk.bf16.mxu0 %vm35_vm1, %v23_v4 }
   0x6   :  { %146 = vmatprep.mubr.msk.bf16.mxu1 %vm35_vm1, %v25_v8  ;;  %143 = vmatmul.mubr.msk.bf16.vlgmr.msra.gmra.mrb[0].mxu0 %vm35_vm1, %v24_v12 }
   0x7   :  { %147 = vmatmul.mubr.msk.bf16.vlgmr.msra.gmra.mrb[0].mxu1 %vm35_vm1, %v26_v13 }
  0xd9   :  { %v144_v15 = vpop.f32.mrb[0].mxu0 }
  0xda   :  { %v148_v16 = vpop.f32.mrb[0].mxu1  ;;  %v95_v17 = vadd.f32 %v144_v15, %v130_v14  ;;  %v86_v19 = vpop.f32.mrb[1].mxu0 }
  0xdb   :  { %v111_v18 = vadd.f32 %v148_v16, %v130_v14  ;;  %v102_v20 = vpop.f32.mrb[1].mxu1  ;;  %v87_v21 = vadd.f32 %v130_v14, %v86_v19  ;;  %v145_v23 = vpop.f32.mrb[2].mxu0 }
  0xdc   :  { %v103_v22 = vadd.f32 %v130_v14, %v102_v20  ;;  %v149_v24 = vpop.f32.mrb[2].mxu1  ;;  %120 = vst.msk [vmem:[%s243_s3 + $0x10] sm:$0xff] %vm117_vm2, %v95_v17  ;;  %v98_v25 = vadd.f32 %v145_v23, %v130_v14  ;;  %v89_v27 = vpop.f32.mrb[3].mxu0 }
  0xdd   :  { %124 = vst.msk [vmem:[%s243_s3 + $0x30] sm:$0xff] %vm117_vm2, %v111_v18  ;;  %v114_v26 = vadd.f32 %v149_v24, %v130_v14  ;;  %v105_v28 = vpop.f32.mrb[3].mxu1  ;;  %118 = vst.msk [vmem:[%s243_s3] sm:$0xff] %vm117_vm2, %v87_v21  ;;  %v90_v29 = vadd.f32 %v130_v14, %v89_v27 }
  0xde   :  { %122 = vst.msk [vmem:[%s243_s3 + $0x20] sm:$0xff] %vm117_vm2, %v103_v22  ;;  %v106_v30 = vadd.f32 %v130_v14, %v105_v28  ;;  %121 = vst.msk [vmem:[%s243_s3 + $0x18] sm:$0xff] %vm117_vm2, %v98_v25 }
  0xdf   :  { %125 = vst.msk [vmem:[%s243_s3 + $0x38] sm:$0xff] %vm117_vm2, %v114_v26  ;;  %119 = vst.msk [vmem:[%s243_s3 + $0x8] sm:$0xff] %vm117_vm2, %v90_v29 }
  0xe0   :  { %123 = vst.msk [vmem:[%s243_s3 + $0x28] sm:$0xff] %vm117_vm2, %v106_v30 }

</bundles_post_ra>
